<compile_context>
chip_gen: v7x
topology: tpu7x:2x2x1
jax: 0.10.0
libtpu: 0.0.40
codegen_flags: <defaults>
</compile_context>

<pallas_src>
import math

import jax
import jax.numpy as jnp
from jax.experimental import pallas as pl
from jax.experimental.pallas import tpu as pltpu

# ------------------------- model hyper-params (small, synthetic) -------------------------
D_MODEL = 32
N_HEAD = 4
HEAD_DIM = D_MODEL // N_HEAD
D_FF = 64
SEQ = 8
BATCH = 2
EPS = 1e-5
_SCALE = 1.0 / math.sqrt(HEAD_DIM)

# approx reciprocal runs on the EUP (free slot); set False for reference-parity numerics.
_APPROX_RECIP = True

PARAM_ORDER = ("wqkv", "bqkv", "wo", "bo", "ln1_g", "ln1_b",
               "w1", "b1", "w2", "b2", "ln2_g", "ln2_b")


# ------------------------------------ kernel helpers ------------------------------------
def _layer_norm(x, gamma, beta):
    # x: (N, D) f32; gamma/beta: (1, D) f32.
    # Independent reductions (sum, sum-of-squares) so the two XLU cross-lane reduces
    # can overlap; var = E[x^2] - mean^2 (clamped >= 0 for numerical safety).
    inv_n = 1.0 / x.shape[-1]
    s1 = jnp.sum(x, axis=-1, keepdims=True)
    s2 = jnp.sum(x * x, axis=-1, keepdims=True)
    mean = s1 * inv_n
    var = jnp.maximum(s2 * inv_n - mean * mean, 0.0)
    return (x - mean) * jax.lax.rsqrt(var + EPS) * gamma + beta


def encoder_layer_kernel(x_ref,
                         wqkv_ref, bqkv_ref, wo_ref, bo_ref,
                         ln1_g_ref, ln1_b_ref,
                         w1_ref, b1_ref, w2_ref, b2_ref,
                         ln2_g_ref, ln2_b_ref,
                         out_ref):
    BS = BATCH * SEQ
    x = x_ref[...]                                          # (B*S, D) f32, VMEM-resident

    # -------- fused QKV projection (softmax scale pre-folded into Q columns/bias) --------
    qkv = jnp.dot(x.astype(jnp.bfloat16), wqkv_ref[...],
                  preferred_element_type=jnp.float32) + bqkv_ref[...]      # (BS, 3D) f32
    qkv3 = qkv.reshape(BATCH, SEQ, 3 * D_MODEL)             # restore batch structure

    # -------- gather all heads into one merged (H*B, S, Hd) batch (leading-dim concat) --------
    def _heads(base):
        return jnp.concatenate(
            [qkv3[:, :, base + h * HEAD_DIM: base + (h + 1) * HEAD_DIM]
             for h in range(N_HEAD)], axis=0).astype(jnp.bfloat16)         # (H*B, S, Hd)

    qh = _heads(0)
    kh = _heads(D_MODEL)
    vh = _heads(2 * D_MODEL)

    # -------- single batched score / softmax / P@V over the merged (head, batch) axis --------
    s = jnp.einsum('bqd,bkd->bqk', qh, kh,
                   preferred_element_type=jnp.float32)                     # (H*B, S, S) f32
    s = s - jnp.max(s, axis=-1, keepdims=True)
    p = jnp.exp(s)
    p = p * pl.reciprocal(jnp.sum(p, axis=-1, keepdims=True), approx=_APPROX_RECIP)
    o = jnp.einsum('bqk,bkd->bqd', p.astype(jnp.bfloat16), vh,
                   preferred_element_type=jnp.float32)                     # (H*B, S, Hd) f32

    # -------- output projection: ONE batched contraction with the per-head-split Wo,
    #          then a parallel head-sum (no serial matmul+accumulate chain) --------
    o_r = o.reshape(N_HEAD, BS, HEAD_DIM).astype(jnp.bfloat16)             # (H, B*S, Hd)
    proj = jnp.einsum('hnd,hdo->hno', o_r, wo_ref[...],
                      preferred_element_type=jnp.float32)                  # (H, B*S, D)
    attn = jnp.sum(proj, axis=0) + bo_ref[...]                             # (B*S, D) f32

    # -------- residual + norm1 (PyTorch post-norm), f32 --------
    x1 = _layer_norm(x + attn, ln1_g_ref[...], ln1_b_ref[...])

    # -------- position-wise feed-forward (ReLU), bf16 matmuls / f32 acc --------
    h1 = jnp.dot(x1.astype(jnp.bfloat16), w1_ref[...],
                 preferred_element_type=jnp.float32) + b1_ref[...]
    h1 = jnp.maximum(h1, 0.0)
    h2 = jnp.dot(h1.astype(jnp.bfloat16), w2_ref[...],
                 preferred_element_type=jnp.float32) + b2_ref[...]

    # -------- residual + norm2 --------
    out_ref[...] = _layer_norm(x1 + h2, ln2_g_ref[...], ln2_b_ref[...])


# ------------------------------------ wrapper ------------------------------------
def transformer_encoder_layer(src, params):
    """Mirrors TransformerEncoderLayer.forward (src_mask=None, src_key_padding_mask=None)."""
    B, S, D = src.shape
    x2 = src.reshape(B * S, D)                              # flatten outside the kernel (free)
    args = [x2] + [params[k] for k in PARAM_ORDER]

    # advisory cost hint so XLA can overlap surrounding HLO with this latency-bound call
    n_tok = B * S
    flops = (2 * n_tok * D * 3 * D                          # fused QKV projection
             + 2 * B * N_HEAD * S * S * HEAD_DIM * 2        # scores + P@V
             + 2 * n_tok * D * D                            # output projection
             + 2 * n_tok * D * D_FF * 2)                    # FFN (two matmuls)
    transcendentals = B * N_HEAD * S * S + B * N_HEAD * S + 2 * n_tok
    bytes_accessed = sum(int(a.size) * a.dtype.itemsize for a in args) + n_tok * D * 4

    out2 = pl.pallas_call(
        encoder_layer_kernel,
        out_shape=jax.ShapeDtypeStruct((B * S, D), jnp.float32),
        # No grid: one invocation, every operand (< ~30 KB total) lives in VMEM.
        cost_estimate=pl.CostEstimate(flops=int(flops),
                                      transcendentals=int(transcendentals),
                                      bytes_accessed=int(bytes_accessed)),
        compiler_params=pltpu.CompilerParams(vmem_limit_bytes=16 * 1024 * 1024),
    )(*args)
    return out2.reshape(B, S, D)


# --------------------------- deterministic synthetic parameters ---------------------------
def init_params(key):
    ks = jax.random.split(key, 6)
    std = 0.02
    wq = std * jax.random.normal(ks[0], (D_MODEL, D_MODEL), jnp.float32)
    wk = std * jax.random.normal(ks[1], (D_MODEL, D_MODEL), jnp.float32)
    wv = std * jax.random.normal(ks[2], (D_MODEL, D_MODEL), jnp.float32)
    wo = std * jax.random.normal(ks[3], (D_MODEL, D_MODEL), jnp.float32)
    w1 = std * jax.random.normal(ks[4], (D_MODEL, D_FF), jnp.float32)
    w2 = std * jax.random.normal(ks[5], (D_FF, D_MODEL), jnp.float32)
    bq = jnp.zeros((D_MODEL,), jnp.float32)
    bk = jnp.zeros((D_MODEL,), jnp.float32)
    bv = jnp.zeros((D_MODEL,), jnp.float32)
    # Linear weights are stored (in, out): kernel computes x @ W + b == x @ W_pt.T + b.
    # Q/K/V are folded into one (D, 3D) projection with the 1/sqrt(head_dim) softmax
    # scale pre-folded into the Q weight columns AND Q bias (weight folding at init,
    # not a runtime op).  The out-projection is pre-split per head to (H, Hd, D).
    # Matmul weights are pre-cast to bf16 (MXU-native); biases / LayerNorm stay f32.
    return {
        "wqkv": jnp.concatenate([wq * _SCALE, wk, wv], axis=1).astype(jnp.bfloat16),  # (D, 3D)
        "bqkv": jnp.concatenate([bq * _SCALE, bk, bv])[None, :].astype(jnp.float32),  # (1, 3D)
        "wo": wo.reshape(N_HEAD, HEAD_DIM, D_MODEL).astype(jnp.bfloat16),             # (H, Hd, D)
        "bo": jnp.zeros((1, D_MODEL), jnp.float32),
        "ln1_g": jnp.ones((1, D_MODEL), jnp.float32),
        "ln1_b": jnp.zeros((1, D_MODEL), jnp.float32),
        "w1": w1.astype(jnp.bfloat16),                                                # (D, F)
        "b1": jnp.zeros((1, D_FF), jnp.float32),
        "w2": w2.astype(jnp.bfloat16),                                                # (F, D)
        "b2": jnp.zeros((1, D_MODEL), jnp.float32),
        "ln2_g": jnp.ones((1, D_MODEL), jnp.float32),
        "ln2_b": jnp.zeros((1, D_MODEL), jnp.float32),
    }


if __name__ == "__main__":
    root = jax.random.PRNGKey(0)
    k_in, k_par = jax.random.split(root)

    # input: (B, S, D) batch-first activations
    src = jax.random.normal(k_in, (BATCH, SEQ, D_MODEL), jnp.float32)
    params = init_params(k_par)

    out = transformer_encoder_layer(src, params)
    out = jax.block_until_ready(out)

    assert out.shape == (BATCH, SEQ, D_MODEL)
    assert jnp.all(jnp.isfinite(out))
    print("KERNEL_OK")
</pallas_src>

<mosaic_0001>
module attributes {stable_mosaic.version = 11 : i64} {
  func.func @encoder_layer_kernel(%arg0: memref<16x32xf32, #tpu.memory_space<vmem>>, %arg1: memref<32x96xbf16, #tpu.memory_space<vmem>>, %arg2: memref<1x96xf32, #tpu.memory_space<vmem>>, %arg3: memref<4x8x32xbf16, #tpu.memory_space<vmem>>, %arg4: memref<1x32xf32, #tpu.memory_space<vmem>>, %arg5: memref<1x32xf32, #tpu.memory_space<vmem>>, %arg6: memref<1x32xf32, #tpu.memory_space<vmem>>, %arg7: memref<32x64xbf16, #tpu.memory_space<vmem>>, %arg8: memref<1x64xf32, #tpu.memory_space<vmem>>, %arg9: memref<64x32xbf16, #tpu.memory_space<vmem>>, %arg10: memref<1x32xf32, #tpu.memory_space<vmem>>, %arg11: memref<1x32xf32, #tpu.memory_space<vmem>>, %arg12: memref<1x32xf32, #tpu.memory_space<vmem>>, %arg13: memref<16x32xf32, #tpu.memory_space<vmem>>) attributes {dimension_semantics = [], scalar_prefetch = 0 : i64, scratch_operands = 0 : i64, tpu.core_type = #tpu.core_type<tc>} {
    %c0 = arith.constant 0 : index
    %c0_0 = arith.constant 0 : index
    %0 = vector.load %arg0[%c0, %c0_0] : memref<16x32xf32, #tpu.memory_space<vmem>>, vector<16x32xf32>
    %1 = arith.truncf %0 : vector<16x32xf32> to vector<16x32xbf16>
    %c0_1 = arith.constant 0 : index
    %c0_2 = arith.constant 0 : index
    %2 = vector.load %arg1[%c0_1, %c0_2] : memref<32x96xbf16, #tpu.memory_space<vmem>>, vector<32x96xbf16>
    %cst = arith.constant dense<0.000000e+00> : vector<16x96xf32>
    %3 = tpu.matmul %1, %2, %cst {dimension_numbers = #tpu.dot_dimension_numbers<[1], [0], [0], [1], [0, 0, 1, 1], [], []>} : vector<16x32xbf16>, vector<32x96xbf16>, vector<16x96xf32> -> vector<16x96xf32>
    %c0_3 = arith.constant 0 : index
    %c0_4 = arith.constant 0 : index
    %4 = vector.load %arg2[%c0_3, %c0_4] : memref<1x96xf32, #tpu.memory_space<vmem>>, vector<1x96xf32>
    %5 = vector.broadcast %4 : vector<1x96xf32> to vector<16x96xf32>
    %6 = arith.addf %3, %5 : vector<16x96xf32>
    %7 = vector.shape_cast %6 : vector<16x96xf32> to vector<2x8x96xf32>
    %8 = vector.extract_strided_slice %7 {offsets = [0, 0, 0], sizes = [2, 8, 8], strides = [1, 1, 1]} : vector<2x8x96xf32> to vector<2x8x8xf32>
    %9 = vector.extract_strided_slice %7 {offsets = [0, 0, 8], sizes = [2, 8, 8], strides = [1, 1, 1]} : vector<2x8x96xf32> to vector<2x8x8xf32>
    %10 = vector.extract_strided_slice %7 {offsets = [0, 0, 16], sizes = [2, 8, 8], strides = [1, 1, 1]} : vector<2x8x96xf32> to vector<2x8x8xf32>
    %11 = vector.extract_strided_slice %7 {offsets = [0, 0, 24], sizes = [2, 8, 8], strides = [1, 1, 1]} : vector<2x8x96xf32> to vector<2x8x8xf32>
    %12 = tpu.concatenate %8, %9, %10, %11 in 0 : vector<2x8x8xf32>, vector<2x8x8xf32>, vector<2x8x8xf32>, vector<2x8x8xf32> -> vector<8x8x8xf32>
    %13 = arith.truncf %12 : vector<8x8x8xf32> to vector<8x8x8xbf16>
    %14 = vector.extract_strided_slice %7 {offsets = [0, 0, 32], sizes = [2, 8, 8], strides = [1, 1, 1]} : vector<2x8x96xf32> to vector<2x8x8xf32>
    %15 = vector.extract_strided_slice %7 {offsets = [0, 0, 40], sizes = [2, 8, 8], strides = [1, 1, 1]} : vector<2x8x96xf32> to vector<2x8x8xf32>
    %16 = vector.extract_strided_slice %7 {offsets = [0, 0, 48], sizes = [2, 8, 8], strides = [1, 1, 1]} : vector<2x8x96xf32> to vector<2x8x8xf32>
    %17 = vector.extract_strided_slice %7 {offsets = [0, 0, 56], sizes = [2, 8, 8], strides = [1, 1, 1]} : vector<2x8x96xf32> to vector<2x8x8xf32>
    %18 = tpu.concatenate %14, %15, %16, %17 in 0 : vector<2x8x8xf32>, vector<2x8x8xf32>, vector<2x8x8xf32>, vector<2x8x8xf32> -> vector<8x8x8xf32>
    %19 = arith.truncf %18 : vector<8x8x8xf32> to vector<8x8x8xbf16>
    %20 = vector.extract_strided_slice %7 {offsets = [0, 0, 64], sizes = [2, 8, 8], strides = [1, 1, 1]} : vector<2x8x96xf32> to vector<2x8x8xf32>
    %21 = vector.extract_strided_slice %7 {offsets = [0, 0, 72], sizes = [2, 8, 8], strides = [1, 1, 1]} : vector<2x8x96xf32> to vector<2x8x8xf32>
    %22 = vector.extract_strided_slice %7 {offsets = [0, 0, 80], sizes = [2, 8, 8], strides = [1, 1, 1]} : vector<2x8x96xf32> to vector<2x8x8xf32>
    %23 = vector.extract_strided_slice %7 {offsets = [0, 0, 88], sizes = [2, 8, 8], strides = [1, 1, 1]} : vector<2x8x96xf32> to vector<2x8x8xf32>
    %24 = tpu.concatenate %20, %21, %22, %23 in 0 : vector<2x8x8xf32>, vector<2x8x8xf32>, vector<2x8x8xf32>, vector<2x8x8xf32> -> vector<8x8x8xf32>
    %25 = arith.truncf %24 : vector<8x8x8xf32> to vector<8x8x8xbf16>
    "tpu.trace_start"() <{level = 10 : i32, message = "bqd,bkd->bqk"}> : () -> ()
    %cst_5 = arith.constant dense<0.000000e+00> : vector<8x8x8xf32>
    %26 = tpu.matmul %13, %19, %cst_5 {dimension_numbers = #tpu.dot_dimension_numbers<[2], [2], [1], [1], [0, 0, 0, 1, 1, 1], [0], [0]>} : vector<8x8x8xbf16>, vector<8x8x8xbf16>, vector<8x8x8xf32> -> vector<8x8x8xf32>
    "tpu.trace_stop"() : () -> ()
    %cst_6 = arith.constant dense<0xFF800000> : vector<8x8xf32>
    %27 = vector.multi_reduction <maximumf>, %26, %cst_6 [2] : vector<8x8x8xf32> to vector<8x8xf32>
    %28 = vector.shape_cast %27 : vector<8x8xf32> to vector<8x8x1xf32>
    %29 = vector.broadcast %28 : vector<8x8x1xf32> to vector<8x8x8xf32>
    %30 = arith.subf %26, %29 : vector<8x8x8xf32>
    %31 = math.exp %30 : vector<8x8x8xf32>
    %cst_7 = arith.constant dense<0.000000e+00> : vector<8x8xf32>
    %32 = vector.multi_reduction <add>, %31, %cst_7 [2] : vector<8x8x8xf32> to vector<8x8xf32>
    %33 = vector.shape_cast %32 : vector<8x8xf32> to vector<8x8x1xf32>
    %34 = tpu.reciprocal %33 {approx = true} : vector<8x8x1xf32> -> vector<8x8x1xf32>
    %35 = vector.broadcast %34 : vector<8x8x1xf32> to vector<8x8x8xf32>
    %36 = arith.mulf %31, %35 : vector<8x8x8xf32>
    %37 = arith.truncf %36 : vector<8x8x8xf32> to vector<8x8x8xbf16>
    "tpu.trace_start"() <{level = 10 : i32, message = "bqk,bkd->bqd"}> : () -> ()
    %cst_8 = arith.constant dense<0.000000e+00> : vector<8x8x8xf32>
    %38 = tpu.matmul %37, %25, %cst_8 {dimension_numbers = #tpu.dot_dimension_numbers<[2], [1], [1], [2], [0, 0, 0, 1, 1, 2], [0], [0]>} : vector<8x8x8xbf16>, vector<8x8x8xbf16>, vector<8x8x8xf32> -> vector<8x8x8xf32>
    "tpu.trace_stop"() : () -> ()
    %39 = vector.shape_cast %38 : vector<8x8x8xf32> to vector<4x16x8xf32>
    %40 = arith.truncf %39 : vector<4x16x8xf32> to vector<4x16x8xbf16>
    %c0_9 = arith.constant 0 : index
    %c0_10 = arith.constant 0 : index
    %c0_11 = arith.constant 0 : index
    %41 = vector.load %arg3[%c0_9, %c0_10, %c0_11] : memref<4x8x32xbf16, #tpu.memory_space<vmem>>, vector<4x8x32xbf16>
    "tpu.trace_start"() <{level = 10 : i32, message = "hnd,hdo->hno"}> : () -> ()
    %cst_12 = arith.constant dense<0.000000e+00> : vector<4x16x32xf32>
    %42 = tpu.matmul %40, %41, %cst_12 {dimension_numbers = #tpu.dot_dimension_numbers<[2], [1], [1], [2], [0, 0, 0, 1, 1, 2], [0], [0]>} : vector<4x16x8xbf16>, vector<4x8x32xbf16>, vector<4x16x32xf32> -> vector<4x16x32xf32>
    "tpu.trace_stop"() : () -> ()
    %cst_13 = arith.constant dense<0.000000e+00> : vector<16x32xf32>
    %43 = vector.multi_reduction <add>, %42, %cst_13 [0] : vector<4x16x32xf32> to vector<16x32xf32>
    %c0_14 = arith.constant 0 : index
    %c0_15 = arith.constant 0 : index
    %44 = vector.load %arg4[%c0_14, %c0_15] : memref<1x32xf32, #tpu.memory_space<vmem>>, vector<1x32xf32>
    %45 = vector.broadcast %44 : vector<1x32xf32> to vector<16x32xf32>
    %46 = arith.addf %43, %45 : vector<16x32xf32>
    %47 = arith.addf %0, %46 : vector<16x32xf32>
    %c0_16 = arith.constant 0 : index
    %c0_17 = arith.constant 0 : index
    %48 = vector.load %arg5[%c0_16, %c0_17] : memref<1x32xf32, #tpu.memory_space<vmem>>, vector<1x32xf32>
    %c0_18 = arith.constant 0 : index
    %c0_19 = arith.constant 0 : index
    %49 = vector.load %arg6[%c0_18, %c0_19] : memref<1x32xf32, #tpu.memory_space<vmem>>, vector<1x32xf32>
    %cst_20 = arith.constant dense<0.000000e+00> : vector<16xf32>
    %50 = vector.multi_reduction <add>, %47, %cst_20 [1] : vector<16x32xf32> to vector<16xf32>
    %51 = vector.shape_cast %50 : vector<16xf32> to vector<16x1xf32>
    %52 = arith.mulf %47, %47 : vector<16x32xf32>
    %cst_21 = arith.constant dense<0.000000e+00> : vector<16xf32>
    %53 = vector.multi_reduction <add>, %52, %cst_21 [1] : vector<16x32xf32> to vector<16xf32>
    %54 = vector.shape_cast %53 : vector<16xf32> to vector<16x1xf32>
    %cst_22 = arith.constant 3.125000e-02 : f32
    %55 = vector.broadcast %cst_22 : f32 to vector<16x1xf32>
    %56 = arith.mulf %51, %55 : vector<16x1xf32>
    %cst_23 = arith.constant 3.125000e-02 : f32
    %57 = vector.broadcast %cst_23 : f32 to vector<16x1xf32>
    %58 = arith.mulf %54, %57 : vector<16x1xf32>
    %59 = arith.mulf %56, %56 : vector<16x1xf32>
    %60 = arith.subf %58, %59 : vector<16x1xf32>
    %cst_24 = arith.constant 0.000000e+00 : f32
    %61 = vector.broadcast %cst_24 : f32 to vector<16x1xf32>
    %62 = arith.maximumf %60, %61 : vector<16x1xf32>
    %63 = vector.broadcast %56 : vector<16x1xf32> to vector<16x32xf32>
    %64 = arith.subf %47, %63 : vector<16x32xf32>
    %cst_25 = arith.constant 9.99999974E-6 : f32
    %65 = vector.broadcast %cst_25 : f32 to vector<16x1xf32>
    %66 = arith.addf %62, %65 : vector<16x1xf32>
    %67 = math.rsqrt %66 : vector<16x1xf32>
    %68 = vector.broadcast %67 : vector<16x1xf32> to vector<16x32xf32>
    %69 = arith.mulf %64, %68 : vector<16x32xf32>
    %70 = vector.broadcast %48 : vector<1x32xf32> to vector<16x32xf32>
    %71 = arith.mulf %69, %70 : vector<16x32xf32>
    %72 = vector.broadcast %49 : vector<1x32xf32> to vector<16x32xf32>
    %73 = arith.addf %71, %72 : vector<16x32xf32>
    %74 = arith.truncf %73 : vector<16x32xf32> to vector<16x32xbf16>
    %c0_26 = arith.constant 0 : index
    %c0_27 = arith.constant 0 : index
    %75 = vector.load %arg7[%c0_26, %c0_27] : memref<32x64xbf16, #tpu.memory_space<vmem>>, vector<32x64xbf16>
    %cst_28 = arith.constant dense<0.000000e+00> : vector<16x64xf32>
    %76 = tpu.matmul %74, %75, %cst_28 {dimension_numbers = #tpu.dot_dimension_numbers<[1], [0], [0], [1], [0, 0, 1, 1], [], []>} : vector<16x32xbf16>, vector<32x64xbf16>, vector<16x64xf32> -> vector<16x64xf32>
    %c0_29 = arith.constant 0 : index
    %c0_30 = arith.constant 0 : index
    %77 = vector.load %arg8[%c0_29, %c0_30] : memref<1x64xf32, #tpu.memory_space<vmem>>, vector<1x64xf32>
    %78 = vector.broadcast %77 : vector<1x64xf32> to vector<16x64xf32>
    %79 = arith.addf %76, %78 : vector<16x64xf32>
    %cst_31 = arith.constant 0.000000e+00 : f32
    %80 = vector.broadcast %cst_31 : f32 to vector<16x64xf32>
    %81 = arith.maximumf %79, %80 : vector<16x64xf32>
    %82 = arith.truncf %81 : vector<16x64xf32> to vector<16x64xbf16>
    %c0_32 = arith.constant 0 : index
    %c0_33 = arith.constant 0 : index
    %83 = vector.load %arg9[%c0_32, %c0_33] : memref<64x32xbf16, #tpu.memory_space<vmem>>, vector<64x32xbf16>
    %cst_34 = arith.constant dense<0.000000e+00> : vector<16x32xf32>
    %84 = tpu.matmul %82, %83, %cst_34 {dimension_numbers = #tpu.dot_dimension_numbers<[1], [0], [0], [1], [0, 0, 1, 1], [], []>} : vector<16x64xbf16>, vector<64x32xbf16>, vector<16x32xf32> -> vector<16x32xf32>
    %c0_35 = arith.constant 0 : index
    %c0_36 = arith.constant 0 : index
    %85 = vector.load %arg10[%c0_35, %c0_36] : memref<1x32xf32, #tpu.memory_space<vmem>>, vector<1x32xf32>
    %86 = vector.broadcast %85 : vector<1x32xf32> to vector<16x32xf32>
    %87 = arith.addf %84, %86 : vector<16x32xf32>
    %88 = arith.addf %73, %87 : vector<16x32xf32>
    %c0_37 = arith.constant 0 : index
    %c0_38 = arith.constant 0 : index
    %89 = vector.load %arg11[%c0_37, %c0_38] : memref<1x32xf32, #tpu.memory_space<vmem>>, vector<1x32xf32>
    %c0_39 = arith.constant 0 : index
    %c0_40 = arith.constant 0 : index
    %90 = vector.load %arg12[%c0_39, %c0_40] : memref<1x32xf32, #tpu.memory_space<vmem>>, vector<1x32xf32>
    %cst_41 = arith.constant dense<0.000000e+00> : vector<16xf32>
    %91 = vector.multi_reduction <add>, %88, %cst_41 [1] : vector<16x32xf32> to vector<16xf32>
    %92 = vector.shape_cast %91 : vector<16xf32> to vector<16x1xf32>
    %93 = arith.mulf %88, %88 : vector<16x32xf32>
    %cst_42 = arith.constant dense<0.000000e+00> : vector<16xf32>
    %94 = vector.multi_reduction <add>, %93, %cst_42 [1] : vector<16x32xf32> to vector<16xf32>
    %95 = vector.shape_cast %94 : vector<16xf32> to vector<16x1xf32>
    %cst_43 = arith.constant 3.125000e-02 : f32
    %96 = vector.broadcast %cst_43 : f32 to vector<16x1xf32>
    %97 = arith.mulf %92, %96 : vector<16x1xf32>
    %cst_44 = arith.constant 3.125000e-02 : f32
    %98 = vector.broadcast %cst_44 : f32 to vector<16x1xf32>
    %99 = arith.mulf %95, %98 : vector<16x1xf32>
    %100 = arith.mulf %97, %97 : vector<16x1xf32>
    %101 = arith.subf %99, %100 : vector<16x1xf32>
    %cst_45 = arith.constant 0.000000e+00 : f32
    %102 = vector.broadcast %cst_45 : f32 to vector<16x1xf32>
    %103 = arith.maximumf %101, %102 : vector<16x1xf32>
    %104 = vector.broadcast %97 : vector<16x1xf32> to vector<16x32xf32>
    %105 = arith.subf %88, %104 : vector<16x32xf32>
    %cst_46 = arith.constant 9.99999974E-6 : f32
    %106 = vector.broadcast %cst_46 : f32 to vector<16x1xf32>
    %107 = arith.addf %103, %106 : vector<16x1xf32>
    %108 = math.rsqrt %107 : vector<16x1xf32>
    %109 = vector.broadcast %108 : vector<16x1xf32> to vector<16x32xf32>
    %110 = arith.mulf %105, %109 : vector<16x32xf32>
    %111 = vector.broadcast %89 : vector<1x32xf32> to vector<16x32xf32>
    %112 = arith.mulf %110, %111 : vector<16x32xf32>
    %113 = vector.broadcast %90 : vector<1x32xf32> to vector<16x32xf32>
    %114 = arith.addf %112, %113 : vector<16x32xf32>
    %c0_47 = arith.constant 0 : index
    %c0_48 = arith.constant 0 : index
    %115 = vector.load %arg13[%c0_47, %c0_48] : memref<16x32xf32, #tpu.memory_space<vmem>>, vector<16x32xf32>
    tpu.vector_store %arg13[%c0_47, %c0_48], %114 {strides = array<i32>} : memref<16x32xf32, #tpu.memory_space<vmem>>, vector<16x32xf32>,
    return
  }
}

</mosaic_0001>

<bundles_post_ra>
// kernel: tpu_custom_call.1
= control target key start
LH: loop header
LB: loop body
LE: loop exit
PB: predicated region body
PF: predicated region fallthrough
CT: control target
= control target key end

     0   :  { %18 = vsyncpa [#allocation3], 0  ;;  %s2295_s0 = inlined_call_operand.vmem [shape: f32[16,32], index: 0, kind: input, shape index: {}]   ;;  %s2296_s1 = inlined_call_operand.vmem [shape: bf16[32,96], index: 1, kind: input, shape index: {}]   ;;  %s2297_s2 = inlined_call_operand.vmem [shape: f32[1,96], index: 2, kind: input, shape index: {}]   ;;  %s2298_s3 = inlined_call_operand.vmem [shape: bf16[4,8,32], index: 3, kind: input, shape index: {}]   ;;  %s2299_s4 = inlined_call_operand.vmem [shape: f32[1,32], index: 4, kind: input, shape index: {}]   ;;  %s2300_s5 = inlined_call_operand.vmem [shape: f32[1,32], index: 5, kind: input, shape index: {}]   ;;  %s2301_s6 = inlined_call_operand.vmem [shape: f32[1,32], index: 6, kind: input, shape index: {}]   ;;  %s2302_s7 = inlined_call_operand.hbm [shape: bf16[32,64], index: 7, kind: input, shape index: {}]   ;;  %s2303_s8 = inlined_call_operand.vmem [shape: f32[1,64], index: 8, kind: input, shape index: {}]   ;;  %s2304_s9 = inlined_call_operand.vmem [shape: bf16[64,32], index: 9, kind: input, shape index: {}]   ;;  %s2305_s10 = inlined_call_operand.vmem [shape: f32[1,32], index: 10, kind: input, shape index: {}]   ;;  %s2306_s11 = inlined_call_operand.vmem [shape: f32[1,32], index: 11, kind: input, shape index: {}]   ;;  %s2307_s12 = inlined_call_operand.vmem [shape: f32[1,32], index: 12, kind: input, shape index: {}]   ;;  %s2308_s13 = inlined_call_operand.hbm [shape: f32[16,32], index: 13, kind: output, shape index: {}]  }
   0x1   :  { %19 = vsyncpa [#allocation4], 0  ;;  %s1891_s25 = smov [#allocation2]   ;;  %s1843_s29 = scalar_lea.hbm %s2302_s7, 256 }
   0x2   :  { %s39_s26 = sshll.u32 %s1891_s25, 4  ;;  %p1844_p0 = scmp.ne.s32.totalorder %s2302_s7, %s1843_s29  ;;  %s40_s26 = int_to_ptr.vmem [resolvable:$true] %s39_s26 }
   0x3   :  { %p1847_p1 = scmp.lt.u32.totalorder %s1843_s29, %s2302_s7 }
   0x5   :  { %p1849_p2 = pnand %p1847_p1, %p1844_p0 }
   0x7   :  { %1852 = shalt.err (!%p1849_p2)
}
   0x8   :  { %s1853_s17 = scalar_lea.vmem %s40_s26, 256  ;;  %p1858_p4 = scmp.lt.s32.totalorder %s40_s26, %s40_s26 }
   0x9   :  { %p1854_p3 = scmp.ne.s32.totalorder %s40_s26, %s1853_s17  ;;  %p1859_p5 = scmp.lt.s32.totalorder %s1853_s17, %s1853_s17 }
   0xb   :  { %p1860_p6 = por %p1859_p5, %p1858_p4 }
   0xd   :  { %p1861_p7 = pnand %p1860_p6, %p1854_p3 }
   0xf   :  { %1864 = shalt.err (!%p1861_p7)
}
  0x10   :  { %s1892_s18 = smov 64   ;;  %s1893_s19 = smov 4  }
  0x11   :  { %45 = dma.hbm_to_vmem [thread:$0]  %s2302_s7, 256, %s40_s26, [#allocation3], %s1892_s18, %s1892_s18, %s1893_s19  }
  0x12   :  { %1887 = dma.done.wait [#allocation3], 256  }
  0x13   :  { %1888 = vsyncadd [#allocation3], 4294967040  ;;  %v1894_v0 = vmov 0.0   ;;  %vm1895_vm0 = vmmov 0   ;;  %v1795_v1 = vld [vmem:[%s2296_s1] sm:$0xff]   ;;  %v1796_v2 = vld [vmem:[%s2296_s1 + $0x8] sm:$0xff]  }
  0x14   :  { %1620 = vmatprep.subr.bf16.mxu1 %v1894_v0  ;;  %1624 = vmatprep.mubr.msk.bf16.mxu1 %vm1895_vm0, %v1894_v0  ;;  %v2002_v3 = vld [vmem:[%s2295_s0] sm:$0xff]  ;;  %v2007_v4 = vld [vmem:[%s2295_s0 + $0x8] sm:$0xff]  ;;  %vm86_vm1 = vcmask 261120   ;;  %s1896_s0 = smov 104   ;;  %s1897_s30 = smov 120   ;;  %vm162_vm2 = vcmask 64512  }
  0x15   :  { %1634 = vmatprep.subr.bf16.mxu0 %v1894_v0  ;;  %1636 = vmatprep.mubr.msk.bf16.mxu0 %vm1895_vm0, %v1894_v0  ;;  %v62_v5 = vpack.c.bf16 %v2007_v4, %v2002_v3  ;;  %v1530_v6 = vld [vmem:[%s2297_s2] ss:$0 sm:$0xff]  ;;  %s1898_s14 = smov 96   ;;  %s1899_s15 = smov 112   ;;  %vm653_vm3 = vcmask 1043456   ;;  %vm1414_vm4 = vcmask 523264  }
  0x16   :  { %1621 = vmatpush3.bf16.msra.mxu1 %v1795_v1  ;;  %s1900_s17 = smov [#allocation5]  }
  0x17   :  { %1622 = vmatprep.subr.bf16.mxu1 %v1894_v0 }
  0x1a   :  { %1623 = vmatpush3.bf16.msra.mxu1 %v1796_v2 }
  0x1b   :  { %1628 = vmatprep.subr.bf16.mxu1 %v1894_v0 }
  0x1d   :  { %1625 = vmatmul.mubr.msk.bf16.vlgmr.msra.gmra.mrb[0].mxu1 %vm86_vm1, %v62_v5 }
  0x1e   :  { %1630 = vmatprep.mubr.msk.bf16.mxu1 %vm1895_vm0, %v1894_v0 }
  0xf0   :  { %v124_v7 = vpop.f32.mrb[0].mxu1 }
  0xf1   :  { %v1626_v8 = vpop.f32.mrb[1].mxu1  ;;  %v125_v10 = vadd.f32 %v1530_v6, %v124_v7 }
  0xf2   :  { %v127_v9 = vpop.f32.mrb[2].mxu1 }
  0xf3   :  { %v128_v11 = vadd.f32 %v1530_v6, %v127_v9  ;;  %v1627_v12 = vpop.f32.mrb[3].mxu1  ;;  %v151_v14 = vpack.c.bf16 %v125_v10, %v125_v10 }
  0xf5   :  { %v1790_v13 = vpack.i.bf16 %v128_v11, %v125_v10  ;;  %v152_v15 = vpack.c.bf16 %v128_v11, %v128_v11 }
  0xf7   :  { %1791 = vrot.lane.b32.xlu1 %v1790_v13, %s1896_s0  ;;  %1781 = vrot.lane.b32.xlu0 %v1790_v13, %s1897_s30 }
  0xfb   :  { %160 = vrot.lane.b32.xlu1 %v151_v14, %s1898_s14  ;;  %1786 = vrot.lane.b32.xlu0 %v1790_v13, %s1899_s15 }
  0xff   :  { %210 = vrot.lane.b32.xlu0 %v152_v15, %s1898_s14 }
 0x169   :  { %v1792_v16 = vpop.permute.xlu1 %1791  ;;  %v1782_v17 = vpop.permute.xlu0 %1781 }
 0x16a   :  { %v1784_v18 = vunpack.i.h.bf16 %v1782_v17  ;;  %v1783_v19 = vunpack.i.l.bf16 %v1782_v17  ;;  %v1793_v27 = vunpack.i.l.bf16 %v1792_v16  ;;  %v1794_v30 = vunpack.i.h.bf16 %v1792_v16 }
 0x16c   :  { %v2021_v20 = vpack.c.bf16 %v1784_v18, %v1784_v18  ;;  %v2023_v21 = vpack.c.bf16 %v1783_v19, %v1783_v19  ;;  %v2040_v33 = vpack.c.bf16 %v1793_v27, %v1793_v27  ;;  %v2043_v34 = vpack.c.bf16 %v1794_v30, %v1794_v30 }
 0x16d   :  { %v161_v22 = vpop.permute.xlu1 %160  ;;  %v1787_v23 = vpop.permute.xlu0 %1786 }
 0x16e   :  { %v167_v24 = vsel %vm162_vm2, %v161_v22, 0  ;;  %v1789_v25 = vunpack.i.h.bf16 %v1787_v23  ;;  %v1788_v26 = vunpack.i.l.bf16 %v1787_v23  ;;  %259 = vrot.lane.b32.xlu1 %v2023_v21, %s1898_s14  ;;  %308 = vrot.lane.b32.xlu0 %v2021_v20, %s1898_s14 }
 0x16f   :  { %1629 = vmatpush3.bf16.xpose.msra.mxu1 %v167_v24 }
 0x170   :  { %v2030_v28 = vpack.c.bf16 %v1789_v25, %v1789_v25  ;;  %v2032_v29 = vpack.c.bf16 %v1788_v26, %v1788_v26  ;;  %1640 = vmatprep.subr.bf16.mxu1 %v1894_v0 }
 0x171   :  { %v211_v31 = vpop.permute.xlu0 %210 }
 0x172   :  { %357 = vrot.lane.b32.xlu1 %v2032_v29, %s1898_s14  ;;  %406 = vrot.lane.b32.xlu0 %v2030_v28, %s1898_s14  ;;  %v216_v32 = vsel %vm162_vm2, %v211_v31, 0 }
 0x173   :  { %1635 = vmatpush3.bf16.xpose.msra.mxu0 %v216_v32 }
 0x174   :  { %1646 = vmatprep.subr.bf16.mxu0 %v1894_v0 }
 0x176   :  { %1631 = vmatmul.mubr.msk.bf16.vlgmr.msra.gmra.mrb[4].mxu1 %vm162_vm2, %v151_v14  ;;  %455 = vrot.lane.b32.xlu1 %v2040_v33, %s1898_s14 }
 0x177   :  { %504 = vrot.lane.b32.xlu0 %v2043_v34, %s1898_s14  ;;  %1642 = vmatprep.mubr.msk.bf16.mxu1 %vm1895_vm0, %v1894_v0 }
 0x17a   :  { %697 = vrot.lane.b32.xlu1 %v152_v15, %s1892_s18  ;;  %1637 = vmatmul.mubr.msk.bf16.vlgmr.msra.gmra.mrb[0].mxu0 %vm162_vm2, %v152_v15 }
 0x17b   :  { %648 = vrot.lane.b32.xlu0 %v151_v14, %s1892_s18  ;;  %1648 = vmatprep.mubr.msk.bf16.mxu0 %vm1895_vm0, %v1894_v0 }
 0x1e0   :  { %v260_v35 = vpop.permute.xlu1 %259  ;;  %v309_v36 = vpop.permute.xlu0 %308 }
 0x1e1   :  { %v265_v37 = vsel %vm162_vm2, %v260_v35, 0  ;;  %v314_v38 = vsel %vm162_vm2, %v309_v36, 0 }
 0x1e2   :  { %1641 = vmatpush3.bf16.xpose.msra.mxu1 %v265_v37  ;;  %1647 = vmatpush3.bf16.xpose.msra.mxu0 %v314_v38 }
 0x1e3   :  { %1652 = vmatprep.subr.bf16.mxu1 %v1894_v0  ;;  %1658 = vmatprep.subr.bf16.mxu0 %v1894_v0 }
 0x1e4   :  { %v358_v39 = vpop.permute.xlu1 %357  ;;  %v407_v40 = vpop.permute.xlu0 %406 }
 0x1e5   :  { %v363_v41 = vsel %vm162_vm2, %v358_v39, 0  ;;  %v412_v42 = vsel %vm162_vm2, %v407_v40, 0 }
 0x1e8   :  { %v456_v43 = vpop.permute.xlu1 %455 }
 0x1e9   :  { %1643 = vmatmul.mubr.msk.bf16.vlgmr.msra.gmra.mrb[8].mxu1 %vm162_vm2, %v2023_v21  ;;  %1649 = vmatmul.mubr.msk.bf16.vlgmr.msra.gmra.mrb[4].mxu0 %vm162_vm2, %v2021_v20  ;;  %v505_v44 = vpop.permute.xlu0 %504  ;;  %v461_v45 = vsel %vm162_vm2, %v456_v43, 0 }
 0x1ea   :  { %1653 = vmatpush3.bf16.xpose.msra.mxu1 %v363_v41  ;;  %1659 = vmatpush3.bf16.xpose.msra.mxu0 %v412_v42  ;;  %v510_v46 = vsel %vm162_vm2, %v505_v44, 0 }
 0x1eb   :  { %1654 = vmatprep.mubr.msk.bf16.mxu1 %vm1895_vm0, %v1894_v0  ;;  %1660 = vmatprep.mubr.msk.bf16.mxu0 %vm1895_vm0, %v1894_v0 }
 0x1ec   :  { %1664 = vmatprep.subr.bf16.mxu1 %v1894_v0  ;;  %1670 = vmatprep.subr.bf16.mxu0 %v1894_v0  ;;  %v698_v47 = vpop.permute.xlu1 %697 }
 0x1ed   :  { %v649_v48 = vpop.permute.xlu0 %648  ;;  %v703_v49 = vsel %vm653_vm3, %v698_v47, 0 }
 0x1ee   :  { %v655_v50 = vsel %vm653_vm3, %v649_v48, 0 }
 0x1f1   :  { %1655 = vmatmul.mubr.msk.bf16.vlgmr.msra.gmra.mrb[12].mxu1 %vm162_vm2, %v2032_v29  ;;  %1661 = vmatmul.mubr.msk.bf16.vlgmr.msra.gmra.mrb[8].mxu0 %vm162_vm2, %v2030_v28 }
 0x1f2   :  { %1665 = vmatpush3.bf16.xpose.msra.mxu1 %v461_v45  ;;  %1671 = vmatpush3.bf16.xpose.msra.mxu0 %v510_v46 }
 0x1f3   :  { %1666 = vmatprep.mubr.msk.bf16.mxu1 %vm1895_vm0, %v1894_v0  ;;  %1672 = vmatprep.mubr.msk.bf16.mxu0 %vm1895_vm0, %v1894_v0 }
 0x1f4   :  { %1676 = vmatprep.subr.bf16.mxu1 %v1894_v0  ;;  %1682 = vmatprep.subr.bf16.mxu0 %v1894_v0 }
 0x1f9   :  { %1667 = vmatmul.mubr.msk.bf16.vlgmr.msra.gmra.mrb[16].mxu1 %vm162_vm2, %v2040_v33  ;;  %1673 = vmatmul.mubr.msk.bf16.vlgmr.msra.gmra.mrb[12].mxu0 %vm162_vm2, %v2043_v34 }
 0x1fa   :  { %1677 = vmatpush3.bf16.msra.mxu1 %v655_v50  ;;  %1683 = vmatpush3.bf16.msra.mxu0 %v703_v49 }
 0x1fb   :  { %1678 = vmatprep.mubr.msk.bf16.mxu1 %vm1895_vm0, %v1894_v0  ;;  %1684 = vmatprep.mubr.msk.bf16.mxu0 %vm1895_vm0, %v1894_v0 }
 0x1fc   :  { %1688 = vmatprep.subr.bf16.mxu1 %v1894_v0  ;;  %1694 = vmatprep.subr.bf16.mxu0 %v1894_v0 }
 0x249   :  { %v203_v51 = vpop.f32.mrb[4].mxu1 }
 0x24a   :  { %v1632_v52 = vpop.f32.mrb[5].mxu1  ;;  %v552_v53 = vsel %vm162_vm2, %v203_v51, -inf }
 0x24b   :  { %553 = vmax.xlane.f32.xlu1 %v552_v53  ;;  %v206_v54 = vpop.f32.mrb[6].mxu1 }
 0x24c   :  { %v1633_v55 = vpop.f32.mrb[7].mxu1 }
 0x24d   :  { %v252_v56 = vpop.f32.mrb[0].mxu0 }
 0x24e   :  { %v1638_v57 = vpop.f32.mrb[1].mxu0  ;;  %v555_v58 = vsel %vm162_vm2, %v252_v56, -inf }
 0x24f   :  { %556 = vmax.xlane.f32.xlu0 %v555_v58  ;;  %v255_v59 = vpop.f32.mrb[2].mxu0 }
 0x250   :  { %v1639_v60 = vpop.f32.mrb[3].mxu0 }
 0x2bc   :  { %v301_v61 = vpop.f32.mrb[8].mxu1  ;;  %v350_v62 = vpop.f32.mrb[4].mxu0 }
 0x2bd   :  { %v1644_v63 = vpop.f32.mrb[9].mxu1  ;;  %v1650_v1 = vpop.f32.mrb[5].mxu0  ;;  %v561_v2 = vsel %vm162_vm2, %v350_v62, -inf  ;;  %v558_v5 = vsel %vm162_vm2, %v301_v61, -inf }
 0x2be   :  { %v353_v6 = vpop.f32.mrb[6].mxu0  ;;  %562 = vmax.xlane.f32.xlu1 %v561_v2  ;;  %559 = vmax.xlane.f32.xlu0 %v558_v5  ;;  %v304_v7 = vpop.f32.mrb[10].mxu1 }
 0x2bf   :  { %v1645_v8 = vpop.f32.mrb[11].mxu1  ;;  %v1651_v9 = vpop.f32.mrb[7].mxu0 }
 0x2c4   :  { %v2101_v10 = vpop.f32.mrb[12].mxu1  ;;  %v448_v11 = vpop.f32.mrb[8].mxu0 }
 0x2c5   :  { %v1656_v12 = vpop.f32.mrb[13].mxu1  ;;  %v1662_v13 = vpop.f32.mrb[9].mxu0  ;;  %v567_v14 = vsel %vm162_vm2, %v448_v11, -inf  ;;  %v564_v15 = vsel %vm162_vm2, %v2101_v10, -inf }
 0x2c6   :  { %v451_v16 = vpop.f32.mrb[10].mxu0  ;;  %568 = vmax.xlane.f32.xlu1 %v567_v14  ;;  %565 = vmax.xlane.f32.xlu0 %v564_v15  ;;  %v402_v17 = vpop.f32.mrb[14].mxu1 }
 0x2c7   :  { %v1657_v18 = vpop.f32.mrb[15].mxu1  ;;  %v1663_v19 = vpop.f32.mrb[11].mxu0 }
 0x2cc   :  { %v2106_v22 = vpop.f32.mrb[16].mxu1  ;;  %v546_v23 = vpop.f32.mrb[12].mxu0 }
 0x2cd   :  { %v1668_v24 = vpop.f32.mrb[17].mxu1  ;;  %v1674_v25 = vpop.f32.mrb[13].mxu0  ;;  %v573_v26 = vsel %vm162_vm2, %v546_v23, -inf  ;;  %v570_v27 = vsel %vm162_vm2, %v2106_v22, -inf }
 0x2ce   :  { %v549_v30 = vpop.f32.mrb[14].mxu0  ;;  %574 = vmax.xlane.f32.xlu1 %v573_v26  ;;  %571 = vmax.xlane.f32.xlu0 %v570_v27  ;;  %v500_v31 = vpop.f32.mrb[18].mxu1 }
 0x2cf   :  { %v1669_v32 = vpop.f32.mrb[19].mxu1  ;;  %v1675_v35 = vpop.f32.mrb[15].mxu0 }
 0x2d8   :  { %v554_v36 = vpop.xlane.xlu1 %553 }
 0x2d9   :  { %v576_v38 = vsub.f32 %v203_v51, %v554_v36 }
 0x2db   :  { %v584_v40 = vmul.f32 1.442695, %v576_v38 }
 0x2dc   :  { %v557_v37 = vpop.xlane.xlu0 %556 }
 0x2dd   :  { %v577_v39 = vsub.f32 %v252_v56, %v557_v37  ;;  %1803 = vpow2.f32 %v584_v40 }
 0x2df   :  { %745 = vrot.lane.b32.xlu1 %v2023_v21, %s1892_s18  ;;  %v586_v41 = vmul.f32 1.442695, %v577_v39 }
 0x2e1   :  { %1805 = vpow2.f32 %v586_v41 }
 0x2e4   :  { %793 = vrot.lane.b32.xlu0 %v2021_v20, %s1892_s18 }
 0x2e7   :  { %v1804_v42 = vpop.eup %1803 }
 0x2e8   :  { %v600_v45 = vsel %vm162_vm2, %v1804_v42, 0.0 }
 0x2eb   :  { %v1806_v43 = vpop.eup %1805 }
 0x2ec   :  { %v603_v44 = vsel %vm162_vm2, %v1806_v43, 0.0 }
 0x303   :  { %604 = vadd.xlane.f32.xlu1 %v603_v44  ;;  %601 = vadd.xlane.f32.xlu0 %v600_v45 }
 0x314   :  { %841 = vrot.lane.b32.xlu1 %v2032_v29, %s1892_s18 }
 0x34b   :  { %v563_v20 = vpop.xlane.xlu1 %562  ;;  %v560_v21 = vpop.xlane.xlu0 %559 }
 0x34c   :  { %v579_v46 = vsub.f32 %v350_v62, %v563_v20  ;;  %v578_v47 = vsub.f32 %v301_v61, %v560_v21 }
 0x34e   :  { %v590_v48 = vmul.f32 1.442695, %v579_v46  ;;  %v588_v49 = vmul.f32 1.442695, %v578_v47 }
 0x350   :  { %1807 = vpow2.f32 %v590_v48 }
 0x351   :  { %1809 = vpow2.f32 %v588_v49 }
 0x353   :  { %v569_v50 = vpop.xlane.xlu1 %568  ;;  %v566_v63 = vpop.xlane.xlu0 %565 }
 0x354   :  { %v581_v51 = vsub.f32 %v448_v11, %v569_v50  ;;  %v580_v1 = vsub.f32 %v2101_v10, %v566_v63 }
 0x356   :  { %v594_v52 = vmul.f32 1.442695, %v581_v51  ;;  %v592_v5 = vmul.f32 1.442695, %v580_v1 }
 0x358   :  { %1811 = vpow2.f32 %v594_v52 }
 0x35a   :  { %v2119_v53 = vpop.eup %1807 }
 0x35b   :  { %v2121_v54 = vpop.eup %1809  ;;  %v575_v55 = vpop.xlane.xlu1 %574  ;;  %v609_v29 = vsel %vm162_vm2, %v2119_v53, 0.0 }
 0x35c   :  { %v583_v56 = vsub.f32 %v546_v23, %v575_v55  ;;  %610 = vadd.xlane.f32.xlu1 %v609_v29  ;;  %v606_v57 = vsel %vm162_vm2, %v2121_v54, 0.0  ;;  %v572_v2 = vpop.xlane.xlu0 %571  ;;  %v1037_v29 = vld [vmem:[%s2298_s3] sm:$0xf] }
 0x35d   :  { %607 = vadd.xlane.f32.xlu0 %v606_v57  ;;  %v582_v6 = vsub.f32 %v2106_v22, %v572_v2  ;;  %v1045_v57 = vsel %vm653_vm3, %v1037_v29, 0 }
 0x35e   :  { %v598_v58 = vmul.f32 1.442695, %v583_v56 }
 0x35f   :  { %v596_v7 = vmul.f32 1.442695, %v582_v6  ;;  %v746_v8 = vpop.permute.xlu1 %745 }
 0x360   :  { %1813 = vpow2.f32 %v598_v58  ;;  %v794_v9 = vpop.permute.xlu0 %793  ;;  %v751_v23 = vsel %vm653_vm3, %v746_v8, 0  ;;  %v1038_v58 = vld [vmem:[%s2298_s3 + $0x4] sm:$0xf]  ;;  %v1039_v8 = vld [vmem:[%s2298_s3 + $0x8] sm:$0xf] }
 0x361   :  { %1815 = vpow2.f32 %v592_v5  ;;  %v799_v22 = vsel %vm653_vm3, %v794_v9, 0  ;;  %v1139_v9 = vsel %vm653_vm3, %v1039_v8, 0 }
 0x362   :  { %v2127_v59 = vpop.eup %1811  ;;  %1817 = vpow2.f32 %v596_v7 }
 0x363   :  { %v615_v60 = vsel %vm162_vm2, %v2127_v59, 0.0 }
 0x364   :  { %616 = vadd.xlane.f32.xlu1 %v615_v60 }
 0x36a   :  { %v2131_v61 = vpop.eup %1813 }
 0x36b   :  { %v621_v62 = vsel %vm162_vm2, %v2131_v61, 0.0  ;;  %v2141_v11 = vpop.eup %1815 }
 0x36c   :  { %622 = vadd.xlane.f32.xlu1 %v621_v62  ;;  %v2145_v10 = vpop.eup %1817 }
 0x373   :  { %889 = vrot.lane.b32.xlu0 %v2030_v28, %s1892_s18  ;;  %v612_v28 = vsel %vm162_vm2, %v2141_v11, 0.0 }
 0x37d   :  { %937 = vrot.lane.b32.xlu1 %v2040_v33, %s1892_s18  ;;  %v618_v33 = vsel %vm162_vm2, %v2145_v10, 0.0 }
 0x390   :  { %v605_v12 = vpop.xlane.xlu1 %604  ;;  %v602_v13 = vpop.xlane.xlu0 %601 }
 0x391   :  { %1819 = vrcp.f32 %v605_v12 }
 0x392   :  { %1821 = vrcp.f32 %v602_v13  ;;  %613 = vadd.xlane.f32.xlu0 %v612_v28 }
 0x394   :  { %v842_v24 = vpop.permute.xlu1 %841 }
 0x396   :  { %619 = vadd.xlane.f32.xlu0 %v618_v33 }
 0x39b   :  { %v1820_v14 = vpop.eup %1819 }
 0x39c   :  { %v1822_v15 = vpop.eup %1821  ;;  %v633_v16 = vmul.f32 %v1820_v14, %v1806_v43 }
 0x39d   :  { %v632_v17 = vmul.f32 %v1822_v15, %v1804_v42 }
 0x39e   :  { %v641_v18 = vpack.c.bf16 %v633_v16, %v633_v16 }
 0x39f   :  { %v640_v19 = vpack.c.bf16 %v632_v17, %v632_v17 }
 0x3a0   :  { %1685 = vmatmul.mubr.msk.bf16.vlgmr.msra.gmra.mrb[16].mxu0 %vm162_vm2, %v641_v18 }
 0x3a1   :  { %1679 = vmatmul.mubr.msk.bf16.vlgmr.msra.gmra.mrb[20].mxu1 %vm162_vm2, %v640_v19  ;;  %1695 = vmatpush3.bf16.msra.mxu0 %v799_v22 }
 0x3a2   :  { %1689 = vmatpush3.bf16.msra.mxu1 %v751_v23  ;;  %1690 = vmatprep.mubr.msk.bf16.mxu1 %vm1895_vm0, %v1894_v0 }
 0x3a3   :  { %1696 = vmatprep.mubr.msk.bf16.mxu0 %vm1895_vm0, %v1894_v0  ;;  %1700 = vmatprep.subr.bf16.mxu1 %v1894_v0 }
 0x3a4   :  { %1706 = vmatprep.subr.bf16.mxu0 %v1894_v0 }
 0x3ac   :  { %985 = vrot.lane.b32.xlu0 %v2043_v34, %s1892_s18  ;;  %v847_v34 = vsel %vm653_vm3, %v842_v24, 0  ;;  %s1518_s18 = sshll.u32 %s1900_s17, 4  ;;  %s1519_s18 = int_to_ptr.vmem [resolvable:$true] %s1518_s18 }
 0x3ad   :  { %p1870_p9 = scmp.lt.s32.totalorder %s1519_s18, %s1519_s18 }
 0x3e9   :  { %v611_v25 = vpop.xlane.xlu1 %610 }
 0x3ea   :  { %1823 = vrcp.f32 %v611_v25  ;;  %v608_v26 = vpop.xlane.xlu0 %607 }
 0x3eb   :  { %1825 = vrcp.f32 %v608_v26 }
 0x3ee   :  { %v890_v36 = vpop.permute.xlu0 %889 }
 0x3ef   :  { %v895_v39 = vsel %vm653_vm3, %v890_v36, 0 }
 0x3f1   :  { %v617_v27 = vpop.xlane.xlu1 %616 }
 0x3f2   :  { %1827 = vrcp.f32 %v617_v27 }
 0x3f4   :  { %v1824_v30 = vpop.eup %1823 }
 0x3f5   :  { %v1826_v31 = vpop.eup %1825  ;;  %v635_v32 = vmul.f32 %v1824_v30, %v2119_v53 }
 0x3f6   :  { %v634_v35 = vmul.f32 %v1826_v31, %v2121_v54 }
 0x3f7   :  { %v643_v37 = vpack.c.bf16 %v635_v32, %v635_v32 }
 0x3f8   :  { %v642_v38 = vpack.c.bf16 %v634_v35, %v634_v35 }
 0x3f9   :  { %1697 = vmatmul.mubr.msk.bf16.vlgmr.msra.gmra.mrb[20].mxu0 %vm162_vm2, %v643_v37  ;;  %v623_v43 = vpop.xlane.xlu1 %622 }
 0x3fa   :  { %1691 = vmatmul.mubr.msk.bf16.vlgmr.msra.gmra.mrb[24].mxu1 %vm162_vm2, %v642_v38  ;;  %1707 = vmatpush3.bf16.msra.mxu0 %v895_v39  ;;  %1829 = vrcp.f32 %v623_v43 }
 0x3fb   :  { %1701 = vmatpush3.bf16.msra.mxu1 %v847_v34  ;;  %1708 = vmatprep.mubr.msk.bf16.mxu0 %vm1895_vm0, %v1894_v0 }
 0x3fc   :  { %v1828_v40 = vpop.eup %1827  ;;  %1718 = vmatprep.subr.bf16.mxu0 %v1894_v0  ;;  %1702 = vmatprep.mubr.msk.bf16.mxu1 %vm1895_vm0, %v1894_v0 }
 0x3fd   :  { %v637_v41 = vmul.f32 %v1828_v40, %v2127_v59  ;;  %1712 = vmatprep.subr.bf16.mxu1 %v1894_v0  ;;  %v938_v51 = vpop.permute.xlu1 %937  ;;  %v1092_v59 = vsel %vm653_vm3, %v1038_v58, 0 }
 0x3fe   :  { %v943_v54 = vsel %vm653_vm3, %v938_v51, 0 }
 0x3ff   :  { %v645_v42 = vpack.c.bf16 %v637_v41, %v637_v41 }
 0x401   :  { %1709 = vmatmul.mubr.msk.bf16.vlgmr.msra.gmra.mrb[24].mxu0 %vm162_vm2, %v645_v42 }
 0x402   :  { %1720 = vmatprep.mubr.msk.bf16.mxu0 %vm1895_vm0, %v1894_v0 }
 0x404   :  { %v1830_v45 = vpop.eup %1829 }
 0x405   :  { %v639_v21 = vmul.f32 %v1830_v45, %v2131_v61 }
 0x407   :  { %v647_v49 = vpack.c.bf16 %v639_v21, %v639_v21 }
 0x41f   :  { %v614_v44 = vpop.xlane.xlu0 %613 }
 0x420   :  { %1831 = vrcp.f32 %v614_v44 }
 0x423   :  { %v620_v20 = vpop.xlane.xlu0 %619 }
 0x424   :  { %1833 = vrcp.f32 %v620_v20 }
 0x427   :  { %v986_v46 = vpop.permute.xlu0 %985 }
 0x428   :  { %v991_v47 = vsel %vm653_vm3, %v986_v46, 0 }
 0x429   :  { %1719 = vmatpush3.bf16.msra.mxu0 %v991_v47 }
 0x42a   :  { %v1832_v48 = vpop.eup %1831  ;;  %1730 = vmatprep.subr.bf16.mxu0 %v1894_v0 }
 0x42b   :  { %v636_v50 = vmul.f32 %v1832_v48, %v2141_v11  ;;  %v1040_v11 = vld [vmem:[%s2298_s3 + $0xc] sm:$0xf] }
 0x42c   :  { %1721 = vmatmul.mubr.msk.bf16.vlgmr.msra.gmra.mrb[28].mxu0 %vm162_vm2, %v647_v49  ;;  %v1186_v15 = vsel %vm653_vm3, %v1040_v11, 0 }
 0x42d   :  { %v644_v52 = vpack.c.bf16 %v636_v50, %v636_v50  ;;  %1732 = vmatprep.mubr.msk.bf16.mxu0 %vm1895_vm0, %v1894_v0  ;;  %1731 = vmatpush3.bf16.msra.mxu0 %v1092_v59 }
 0x42e   :  { %v1834_v53 = vpop.eup %1833  ;;  %1742 = vmatprep.subr.bf16.mxu0 %v1894_v0 }
 0x42f   :  { %1703 = vmatmul.mubr.msk.bf16.vlgmr.msra.gmra.mrb[28].mxu1 %vm162_vm2, %v644_v52  ;;  %v638_v55 = vmul.f32 %v1834_v53, %v2145_v10 }
 0x430   :  { %1713 = vmatpush3.bf16.msra.mxu1 %v943_v54  ;;  %1714 = vmatprep.mubr.msk.bf16.mxu1 %vm1895_vm0, %v1894_v0 }
 0x431   :  { %1724 = vmatprep.subr.bf16.mxu1 %v1894_v0  ;;  %v646_v56 = vpack.c.bf16 %v638_v55, %v638_v55 }
 0x437   :  { %1715 = vmatmul.mubr.msk.bf16.vlgmr.msra.gmra.mrb[32].mxu1 %vm162_vm2, %v646_v56 }
 0x438   :  { %1725 = vmatpush3.bf16.msra.mxu1 %v1045_v57  ;;  %1726 = vmatprep.mubr.msk.bf16.mxu1 %vm1895_vm0, %v1894_v0 }
 0x439   :  { %1736 = vmatprep.subr.bf16.mxu1 %v1894_v0 }
 0x473   :  { %v739_v60 = vpop.f32.mrb[16].mxu0 }
 0x474   :  { %v691_v61 = vpop.f32.mrb[20].mxu1  ;;  %v1686_v62 = vpop.f32.mrb[17].mxu0 }
 0x475   :  { %v1033_v63 = vpack.c.bf16 %v739_v60, %v691_v61  ;;  %v1680_v1 = vpop.f32.mrb[21].mxu1  ;;  %v742_v2 = vpop.f32.mrb[18].mxu0 }
 0x476   :  { %v694_v5 = vpop.f32.mrb[22].mxu1  ;;  %v1687_v6 = vpop.f32.mrb[19].mxu0 }
 0x477   :  { %v1681_v7 = vpop.f32.mrb[23].mxu1  ;;  %1727 = vmatmul.mubr.msk.bf16.vlgmr.msra.gmra.mrb[36].mxu1 %vm162_vm2, %v1033_v63  ;;  %v1554_v63 = vld [vmem:[%s2299_s4] ss:$0 sm:$0xff] }
 0x478   :  { %1738 = vmatprep.mubr.msk.bf16.mxu1 %vm1895_vm0, %v1894_v0  ;;  %1737 = vmatpush3.bf16.msra.mxu1 %v1139_v9 }
 0x479   :  { %1748 = vmatprep.subr.bf16.mxu1 %v1894_v0 }
 0x4cc   :  { %v835_v12 = vpop.f32.mrb[20].mxu0 }
 0x4cd   :  { %v787_v13 = vpop.f32.mrb[24].mxu1  ;;  %v1698_v28 = vpop.f32.mrb[21].mxu0 }
 0x4ce   :  { %v1034_v10 = vpack.c.bf16 %v835_v12, %v787_v13  ;;  %v1692_v33 = vpop.f32.mrb[25].mxu1  ;;  %v838_v14 = vpop.f32.mrb[22].mxu0 }
 0x4cf   :  { %v790_v16 = vpop.f32.mrb[26].mxu1  ;;  %v1699_v17 = vpop.f32.mrb[23].mxu0 }
 0x4d0   :  { %v1693_v18 = vpop.f32.mrb[27].mxu1  ;;  %1733 = vmatmul.mubr.msk.bf16.vlgmr.msra.gmra.mrb[32].mxu0 %vm162_vm2, %v1034_v10  ;;  %v1797_v17 = vld [vmem:[#allocation2] sm:$0xff]  }
 0x4d1   :  { %1743 = vmatpush3.bf16.msra.mxu0 %v1186_v15  ;;  %1744 = vmatprep.mubr.msk.bf16.mxu0 %vm1895_vm0, %v1894_v0  ;;  %v1798_v18 = vld [vmem:[#allocation2 + $0x8] sm:$0xff]  }
 0x4d2   :  { %1756 = vmatprep.subr.bf16.mxu0 %v1894_v0 }
 0x4d4   :  { %v931_v19 = vpop.f32.mrb[24].mxu0 }
 0x4d5   :  { %v1710_v22 = vpop.f32.mrb[25].mxu0 }
 0x4d6   :  { %v934_v23 = vpop.f32.mrb[26].mxu0 }
 0x4d7   :  { %v1711_v24 = vpop.f32.mrb[27].mxu0 }
 0x4ff   :  { %v1027_v25 = vpop.f32.mrb[28].mxu0 }
 0x500   :  { %v1722_v26 = vpop.f32.mrb[29].mxu0 }
 0x501   :  { %v1030_v27 = vpop.f32.mrb[30].mxu0 }
 0x502   :  { %v883_v30 = vpop.f32.mrb[28].mxu1  ;;  %v1723_v31 = vpop.f32.mrb[31].mxu0 }
 0x503   :  { %v1035_v32 = vpack.c.bf16 %v931_v19, %v883_v30  ;;  %v1704_v35 = vpop.f32.mrb[29].mxu1 }
 0x504   :  { %v886_v36 = vpop.f32.mrb[30].mxu1 }
 0x505   :  { %v1705_v37 = vpop.f32.mrb[31].mxu1  ;;  %1739 = vmatmul.mubr.msk.bf16.vlgmr.msra.gmra.mrb[40].mxu1 %vm162_vm2, %v1035_v32 }
 0x506   :  { %1752 = vmatprep.mubr.msk.bf16.mxu1 %vm1895_vm0, %v1894_v0  ;;  %1749 = vmatpush3.bf16.msra.mxu1 %v1797_v17 }
 0x507   :  { %1750 = vmatprep.subr.bf16.mxu1 %v1894_v0 }
 0x50a   :  { %v979_v38 = vpop.f32.mrb[32].mxu1  ;;  %1751 = vmatpush3.bf16.msra.mxu1 %v1798_v18 }
 0x50b   :  { %v1036_v39 = vpack.c.bf16 %v1027_v25, %v979_v38  ;;  %v1716_v34 = vpop.f32.mrb[33].mxu1 }
 0x50c   :  { %v982_v40 = vpop.f32.mrb[34].mxu1 }
 0x50d   :  { %v1717_v41 = vpop.f32.mrb[35].mxu1  ;;  %1745 = vmatmul.mubr.msk.bf16.vlgmr.msra.gmra.mrb[36].mxu0 %vm162_vm2, %v1036_v39 }
 0x50e   :  { %1764 = vmatprep.mubr.msk.bf16.mxu0 %vm1895_vm0, %v1894_v0 }
 0x54a   :  { %v1081_v42 = vpop.f32.mrb[36].mxu1 }
 0x54b   :  { %v1728_v43 = vpop.f32.mrb[37].mxu1  ;;  %v1229_v21 = vsel %vm86_vm1, %v1081_v42, 0.0  ;;  %v1555_v42 = vld [vmem:[%s2300_s5] ss:$0 sm:$0xff] }
 0x54c   :  { %v1084_v44 = vpop.f32.mrb[38].mxu1 }
 0x54d   :  { %v1729_v45 = vpop.f32.mrb[39].mxu1  ;;  %v1236_v50 = vsel %vm86_vm1, %v1084_v44, 0.0 }
 0x5a3   :  { %v1128_v20 = vpop.f32.mrb[32].mxu0 }
 0x5a4   :  { %v1230_v46 = vsel %vm86_vm1, %v1128_v20, 0.0  ;;  %v1734_v47 = vpop.f32.mrb[33].mxu0 }
 0x5a5   :  { %v1231_v48 = vadd.f32 %v1230_v46, %v1229_v21  ;;  %v1131_v49 = vpop.f32.mrb[34].mxu0  ;;  %v1556_v46 = vld [vmem:[%s2301_s6] ss:$0 sm:$0xff] }
 0x5a6   :  { %v1237_v51 = vsel %vm86_vm1, %v1131_v49, 0.0  ;;  %v1735_v52 = vpop.f32.mrb[35].mxu0 }
 0x5a7   :  { %v1238_v53 = vadd.f32 %v1237_v51, %v1236_v50  ;;  %v1801_v51 = vld [vmem:[%s2304_s9 + $0x10] sm:$0xff]   ;;  %v1802_v52 = vld [vmem:[%s2304_s9 + $0x18] sm:$0xff]  }
 0x5d8   :  { %v1175_v54 = vpop.f32.mrb[40].mxu1 }
 0x5d9   :  { %v1232_v55 = vsel %vm86_vm1, %v1175_v54, 0.0  ;;  %v1740_v29 = vpop.f32.mrb[41].mxu1 }
 0x5da   :  { %v1233_v56 = vadd.f32 %v1232_v55, %v1231_v48  ;;  %v1178_v57 = vpop.f32.mrb[42].mxu1 }
 0x5db   :  { %v1239_v58 = vsel %vm86_vm1, %v1178_v57, 0.0  ;;  %v1741_v59 = vpop.f32.mrb[43].mxu1 }
 0x5dc   :  { %v1240_v60 = vadd.f32 %v1239_v58, %v1238_v53  ;;  %v1557_v53 = vld [vmem:[%s2303_s8] ss:$0 sm:$0xff] }
 0x5e0   :  { %v1222_v61 = vpop.f32.mrb[36].mxu0 }
 0x5e1   :  { %v1234_v62 = vsel %vm86_vm1, %v1222_v61, 0.0  ;;  %v1746_v1 = vpop.f32.mrb[37].mxu0 }
 0x5e2   :  { %v1235_v2 = vadd.f32 %v1234_v62, %v1233_v56  ;;  %v1225_v5 = vpop.f32.mrb[38].mxu0 }
 0x5e3   :  { %v1241_v6 = vsel %vm86_vm1, %v1225_v5, 0.0  ;;  %v1747_v7 = vpop.f32.mrb[39].mxu0 }
 0x5e4   :  { %v1250_v8 = vadd.f32 %v1554_v63, %v1235_v2  ;;  %v1242_v9 = vadd.f32 %v1241_v6, %v1240_v60 }
 0x5e6   :  { %v1251_v11 = vadd.f32 %v1554_v63, %v1242_v9  ;;  %v1252_v12 = vadd.f32 %v1250_v8, %v2002_v3  ;;  %v1799_v3 = vld [vmem:[%s2304_s9] sm:$0xff]  }
 0x5e7   :  { %1757 = vmatpush3.bf16.msra.mxu0 %v1799_v3 }
 0x5e8   :  { %v1256_v13 = vsel %vm86_vm1, %v1252_v12, 0.0  ;;  %v1253_v28 = vadd.f32 %v1251_v11, %v2007_v4  ;;  %v1262_v14 = vmul.f32 %v1252_v12, %v1252_v12  ;;  %v1800_v4 = vld [vmem:[%s2304_s9 + $0x8] sm:$0xff]   ;;  %1758 = vmatprep.subr.bf16.mxu0 %v1894_v0 }
 0x5e9   :  { %1257 = vadd.xlane.f32.xlu1 %v1256_v13 }
 0x5ea   :  { %v1259_v10 = vsel %vm86_vm1, %v1253_v28, 0.0  ;;  %v1263_v33 = vmul.f32 %v1253_v28, %v1253_v28  ;;  %v1264_v16 = vsel %vm86_vm1, %v1262_v14, 0.0 }
 0x5eb   :  { %1260 = vadd.xlane.f32.xlu0 %v1259_v10  ;;  %1759 = vmatpush3.bf16.msra.mxu0 %v1800_v4 }
 0x5ec   :  { %v1267_v15 = vsel %vm86_vm1, %v1263_v33, 0.0  ;;  %1760 = vmatprep.subr.bf16.mxu0 %v1894_v0 }
 0x5ed   :  { %1268 = vadd.xlane.f32.xlu1 %v1267_v15 }
 0x5ef   :  { %1265 = vadd.xlane.f32.xlu0 %v1264_v16  ;;  %1761 = vmatpush3.bf16.msra.mxu0 %v1801_v51 }
 0x5f0   :  { %1762 = vmatprep.subr.bf16.mxu0 %v1894_v0  ;;  %v1561_v0 = vld [vmem:[%s2305_s10] ss:$0 sm:$0xff] }
 0x5f3   :  { %1763 = vmatpush3.bf16.msra.mxu0 %v1802_v52 }
 0x676   :  { %v1258_v19 = vpop.xlane.xlu1 %1257 }
 0x677   :  { %v1270_v23 = vmul.f32 0.03125, %v1258_v19 }
 0x678   :  { %v1261_v22 = vpop.xlane.xlu0 %1260 }
 0x679   :  { %v1271_v24 = vmul.f32 0.03125, %v1261_v22  ;;  %v1274_v31 = vmul.f32 %v1270_v23, %v1270_v23  ;;  %v1280_v43 = vsub.f32 %v1252_v12, %v1270_v23 }
 0x67a   :  { %v1269_v25 = vpop.xlane.xlu1 %1268 }
 0x67b   :  { %v1275_v26 = vmul.f32 %v1271_v24, %v1271_v24  ;;  %v1273_v27 = vmul.f32 0.03125, %v1269_v25  ;;  %v1281_v40 = vsub.f32 %v1253_v28, %v1271_v24 }
 0x67c   :  { %v1266_v30 = vpop.xlane.xlu0 %1265 }
 0x67d   :  { %v1277_v32 = vsub.f32 %v1273_v27, %v1275_v26  ;;  %v1272_v35 = vmul.f32 0.03125, %v1266_v30 }
 0x67f   :  { %v1279_v36 = vmax.f32 %v1277_v32, 0.0  ;;  %v1276_v37 = vsub.f32 %v1272_v35, %v1274_v31  ;;  %v1567_v35 = vld [vmem:[%s2306_s11] ss:$0 sm:$0xff]  ;;  %s1865_s11 = scalar_lea.vmem %s1519_s18, 256 }
 0x680   :  { %p1866_p8 = scmp.ne.s32.totalorder %s1519_s18, %s1865_s11  ;;  %p1871_p10 = scmp.lt.s32.totalorder %s1865_s11, %s1865_s11 }
 0x681   :  { %v1283_v38 = vadd.f32 1e-05, %v1279_v36  ;;  %v1278_v39 = vmax.f32 %v1276_v37, 0.0 }
 0x682   :  { %p1872_p11 = por %p1871_p10, %p1870_p9 }
 0x683   :  { %1835 = vrsqrt.f32 %v1283_v38  ;;  %v1282_v34 = vadd.f32 1e-05, %v1278_v39  ;;  %v1568_v39 = vld [vmem:[%s2307_s12] ss:$0 sm:$0xff] }
 0x684   :  { %p1873_p12 = pnand %p1872_p11, %p1866_p8 }
 0x685   :  { %1837 = vrsqrt.f32 %v1282_v34 }
 0x68d   :  { %v1836_v41 = vpop.eup %1835 }
 0x68e   :  { %v1287_v44 = vmul.f32 %v1836_v41, %v1281_v40 }
 0x68f   :  { %v1838_v45 = vpop.eup %1837 }
 0x690   :  { %v1286_v20 = vmul.f32 %v1838_v45, %v1280_v43  ;;  %v1295_v21 = vmul.f32 %v1555_v42, %v1287_v44 }
 0x692   :  { %v1294_v47 = vmul.f32 %v1555_v42, %v1286_v20  ;;  %v1303_v49 = vadd.f32 %v1556_v46, %v1295_v21 }
 0x694   :  { %v1302_v48 = vadd.f32 %v1556_v46, %v1294_v47 }
 0x696   :  { %v1304_v50 = vpack.c.bf16 %v1303_v49, %v1302_v48 }
 0x698   :  { %1753 = vmatmul.mubr.msk.bf16.vlgmr.msra.gmra.mrb[44].mxu1 %vm86_vm1, %v1304_v50 }
 0x76b   :  { %v1365_v54 = vpop.f32.mrb[44].mxu1 }
 0x76c   :  { %v1366_v55 = vadd.f32 %v1557_v53, %v1365_v54  ;;  %v1754_v29 = vpop.f32.mrb[45].mxu1 }
 0x76d   :  { %v1368_v56 = vpop.f32.mrb[46].mxu1 }
 0x76e   :  { %v1369_v57 = vadd.f32 %v1557_v53, %v1368_v56  ;;  %v1755_v58 = vpop.f32.mrb[47].mxu1  ;;  %v1372_v59 = vmax.f32 %v1366_v55, 0.0 }
 0x770   :  { %v1373_v60 = vmax.f32 %v1369_v57, 0.0 }
 0x772   :  { %v1374_v61 = vpack.c.bf16 %v1373_v60, %v1372_v59 }
 0x774   :  { %1765 = vmatmul.mubr.msk.bf16.vlgmr.msra.gmra.mrb[40].mxu0 %vm1414_vm4, %v1374_v61 }
 0x847   :  { %v1452_v62 = vpop.f32.mrb[40].mxu0 }
 0x848   :  { %v1453_v63 = vadd.f32 %v1561_v0, %v1452_v62  ;;  %v1766_v1 = vpop.f32.mrb[41].mxu0 }
 0x849   :  { %v1455_v2 = vpop.f32.mrb[42].mxu0 }
 0x84a   :  { %v1459_v5 = vadd.f32 %v1453_v63, %v1302_v48  ;;  %v1456_v6 = vadd.f32 %v1561_v0, %v1455_v2  ;;  %v1767_v7 = vpop.f32.mrb[43].mxu0 }
 0x84c   :  { %v1460_v8 = vadd.f32 %v1456_v6, %v1303_v49  ;;  %v1463_v9 = vsel %vm86_vm1, %v1459_v5, 0.0  ;;  %v1469_v11 = vmul.f32 %v1459_v5, %v1459_v5 }
 0x84d   :  { %1464 = vadd.xlane.f32.xlu0 %v1463_v9 }
 0x84e   :  { %v1466_v12 = vsel %vm86_vm1, %v1460_v8, 0.0  ;;  %v1470_v13 = vmul.f32 %v1460_v8, %v1460_v8  ;;  %v1471_v28 = vsel %vm86_vm1, %v1469_v11, 0.0 }
 0x84f   :  { %1467 = vadd.xlane.f32.xlu1 %v1466_v12 }
 0x850   :  { %v1474_v10 = vsel %vm86_vm1, %v1470_v13, 0.0 }
 0x851   :  { %1472 = vadd.xlane.f32.xlu0 %v1471_v28 }
 0x853   :  { %1475 = vadd.xlane.f32.xlu1 %v1474_v10 }
 0x8da   :  { %v1465_v33 = vpop.xlane.xlu0 %1464 }
 0x8db   :  { %v1477_v14 = vmul.f32 0.03125, %v1465_v33 }
 0x8dc   :  { %v1468_v15 = vpop.xlane.xlu1 %1467 }
 0x8dd   :  { %v1478_v16 = vmul.f32 0.03125, %v1468_v15  ;;  %v1481_v18 = vmul.f32 %v1477_v14, %v1477_v14  ;;  %v1487_v31 = vsub.f32 %v1459_v5, %v1477_v14 }
 0x8de   :  { %v1473_v17 = vpop.xlane.xlu0 %1472 }
 0x8df   :  { %v1479_v3 = vmul.f32 0.03125, %v1473_v17  ;;  %v1482_v19 = vmul.f32 %v1478_v16, %v1478_v16  ;;  %v1488_v36 = vsub.f32 %v1460_v8, %v1478_v16 }
 0x8e0   :  { %v1476_v4 = vpop.xlane.xlu1 %1475 }
 0x8e1   :  { %v1483_v22 = vsub.f32 %v1479_v3, %v1481_v18  ;;  %v1480_v23 = vmul.f32 0.03125, %v1476_v4 }
 0x8e3   :  { %v1485_v24 = vmax.f32 %v1483_v22, 0.0  ;;  %v1484_v25 = vsub.f32 %v1480_v23, %v1482_v19 }
 0x8e5   :  { %v1489_v26 = vadd.f32 1e-05, %v1485_v24  ;;  %v1486_v27 = vmax.f32 %v1484_v25, 0.0 }
 0x8e7   :  { %1839 = vrsqrt.f32 %v1489_v26  ;;  %v1490_v30 = vadd.f32 1e-05, %v1486_v27 }
 0x8e9   :  { %1841 = vrsqrt.f32 %v1490_v30 }
 0x8f1   :  { %v1840_v32 = vpop.eup %1839 }
 0x8f2   :  { %v1493_v37 = vmul.f32 %v1840_v32, %v1487_v31 }
 0x8f3   :  { %v1842_v38 = vpop.eup %1841 }
 0x8f4   :  { %v1494_v34 = vmul.f32 %v1842_v38, %v1488_v36  ;;  %v1501_v40 = vmul.f32 %v1567_v35, %v1493_v37 }
 0x8f6   :  { %v1502_v41 = vmul.f32 %v1567_v35, %v1494_v34  ;;  %v1509_v42 = vadd.f32 %v1568_v39, %v1501_v40 }
 0x8f8   :  { %v1510_v43 = vadd.f32 %v1568_v39, %v1502_v41  ;;  %1511 = vst.msk [vmem:[#allocation5] sm:$0xff] %vm86_vm1, %v1509_v42 }
 0x8fa   :  { %1512 = vst.msk [vmem:[#allocation5 + $0x8] sm:$0xff] %vm86_vm1, %v1510_v43 }
 0x8fb   :  { %1876 = shalt.err (!%p1873_p12)
}
 0x8fc   :  { %s1877_s20 = scalar_lea.hbm %s2308_s13, 256 }
 0x8fd   :  { %p1878_p13 = scmp.ne.s32.totalorder %s2308_s13, %s1877_s20  ;;  %p1881_p0 = scmp.lt.u32.totalorder %s1877_s20, %s2308_s13 }
 0x8ff   :  { %p1883_p1 = pnand %p1881_p0, %p1878_p13 }
 0x901   :  { %1886 = shalt.err (!%p1883_p1)
}
 0x902   :  { %s1901_s4 = smov 128   ;;  %s1902_s7 = smov 8  }
 0x903   :  { %1524 = dma.vmem_to_hbm [thread:$0]  %s1519_s18, 256, %s2308_s13, [#allocation4], %s1901_s4, %s1901_s4, %s1902_s7  }
 0x904   :  { %1889 = dma.done.wait [#allocation4], 256  }
 0x905   :  { %1890 = vsyncadd [#allocation4], 4294967040 }
 0x906   :  { %1528 = vsyncpa [#allocation3], 1 }
 0x907   :  { %1529 = vsyncpa [#allocation4], 1 }

</bundles_post_ra>
